<compile_context>
chip_gen: v7x
topology: tpu7x:2x2x1
jax: 0.10.0
libtpu: 0.0.40
codegen_flags: <defaults>
</compile_context>

<pallas_src>
import functools

import jax
import jax.numpy as jnp
from jax.experimental import pallas as pl
from jax.experimental.pallas import tpu as pltpu

BN_EPS = 1e-5
VMEM_LIMIT = 48 * 1024 * 1024  # leave headroom below v7x's 64 MiB physical VMEM


# ---------------------------------------------------------------------------
# Pallas kernels
# ---------------------------------------------------------------------------
def _mm_affine_kernel(a_ref, b_ref, s_ref, c_ref, o_ref, *, relu):
    """out = [relu]((A @ B) * scale + bias); bf16 MXU inputs, f32 acc + epilogue."""
    acc = jnp.dot(a_ref[...], b_ref[...], preferred_element_type=jnp.float32)
    out = acc * s_ref[...] + c_ref[...]
    if relu:
        out = jnp.maximum(out, 0.0)
    o_ref[...] = out.astype(o_ref.dtype)


def _conv3x3_kernel(*refs, Wp, W, Mspan, has_res):
    """Fused 3x3 stride-1 conv + BN + (residual) + ReLU, no im2col.

    x_ref: (1, Hp*Wp, Cin) bf16 flat padded activation (resident in VMEM)
    w_ref: (9, Cin, tn) bf16 ;  s/c: (1, tn) f32 ; r_ref: (1, Mspan, tn) bf16
    The output uses the "flat-junk" layout: Mspan = (H-1)*Wp + W rows, with the
    2 inter-row junk columns masked to exact zero so it chains into the next conv.
    """
    if has_res:
        x_ref, w_ref, s_ref, c_ref, r_ref, o_ref, acc_ref = refs
    else:
        x_ref, w_ref, s_ref, c_ref, o_ref, acc_ref = refs
        r_ref = None
    acc_ref[...] = jnp.zeros_like(acc_ref)
    for di in range(3):
        for dj in range(3):
            off = di * Wp + dj                       # static element offset
            slab = x_ref[0, pl.ds(off, Mspan), :]    # shifted slab, no HBM copy
            acc_ref[...] += jnp.dot(slab, w_ref[di * 3 + dj],
                                    preferred_element_type=jnp.float32)
    out = acc_ref[...] * s_ref[...] + c_ref[...]
    if r_ref is not None:
        out = out + r_ref[0].astype(jnp.float32)
    out = jnp.maximum(out, 0.0)
    # zero the junk columns (flat position m with (m mod Wp) >= W)
    col = jax.lax.broadcasted_iota(jnp.int32, (Mspan, 1), 0) % Wp
    out = jnp.where(col < W, out, 0.0)
    o_ref[0] = out.astype(o_ref.dtype)


def _norm_kernel(x_ref, sb_ref, o_ref):
    # global affine: y = x * scale + shift   (scale/shift scalars in SMEM)
    o_ref[...] = (x_ref[...] * sb_ref[0] + sb_ref[1]).astype(o_ref.dtype)


def _maxpool_kernel(ee_ref, eo_ref, oe_ref, oo_ref, o_ref):
    # 3x3 / stride-2 max over 4 even/odd phase views; 9 shifted in-VMEM reads.
    Ho, Wo = o_ref.shape[1], o_ref.shape[2]
    m = jnp.maximum
    out = ee_ref[0, :Ho, :Wo, :]
    out = m(out, ee_ref[0, 1:Ho + 1, :Wo, :])
    out = m(out, ee_ref[0, :Ho, 1:Wo + 1, :])
    out = m(out, ee_ref[0, 1:Ho + 1, 1:Wo + 1, :])
    out = m(out, eo_ref[0, :Ho, :Wo, :])
    out = m(out, eo_ref[0, 1:Ho + 1, :Wo, :])
    out = m(out, oe_ref[0, :Ho, :Wo, :])
    out = m(out, oe_ref[0, :Ho, 1:Wo + 1, :])
    out = m(out, oo_ref[0, :Ho, :Wo, :])
    o_ref[0] = out


def _avgpool_kernel(x_ref, o_ref, *, inv_n):
    # global average pool directly on the flat-junk layout (junk rows are 0)
    o_ref[...] = jnp.sum(x_ref[...].astype(jnp.float32), axis=1) * inv_n


# ---------------------------------------------------------------------------
# Pallas wrappers
# ---------------------------------------------------------------------------
def matmul_affine(a, b, scale, bias, relu=True, out_dtype=jnp.bfloat16):
    """(M,K)@(K,N) * scale + bias, ReLU — bf16 MXU, tiled over M and N."""
    M, K = a.shape
    Kb, N = b.shape
    assert K == Kb
    a = a.astype(jnp.bfloat16)
    b = b.astype(jnp.bfloat16)
    scale2 = scale.reshape(1, N).astype(jnp.float32)
    bias2 = bias.reshape(1, N).astype(jnp.float32)
    tm = M if M <= 1024 else 1024
    tn = N if N <= 256 else 256
    if N % tn:
        tn = N
    grid = (pl.cdiv(M, tm), N // tn)
    kernel = functools.partial(_mm_affine_kernel, relu=relu)
    return pl.pallas_call(
        kernel,
        out_shape=jax.ShapeDtypeStruct((M, N), out_dtype),
        grid=grid,
        in_specs=[
            pl.BlockSpec((tm, K), lambda i, j: (i, 0)),
            pl.BlockSpec((K, tn), lambda i, j: (0, j)),
            pl.BlockSpec((1, tn), lambda i, j: (0, j)),
            pl.BlockSpec((1, tn), lambda i, j: (0, j)),
        ],
        out_specs=pl.BlockSpec((tm, tn), lambda i, j: (i, j)),
        compiler_params=pltpu.CompilerParams(
            dimension_semantics=("parallel", "parallel"),
            vmem_limit_bytes=VMEM_LIMIT,
        ),
    )(a, b, scale2, bias2)


def conv3x3_fused(f, H, W, w9, scale, bias, residual=None):
    """Fused 3x3/s1 conv+BN+(res)+ReLU.  f: (B,(H+2)*(W+2),Cin) flat padded bf16."""
    B, L, Cin = f.shape
    Wp = W + 2
    assert L == (H + 2) * Wp and w9.shape[1] == Cin
    Cout = w9.shape[-1]
    Mspan = (H - 1) * Wp + W
    tn = Cout if Cout <= 256 else 256
    scale2 = scale.reshape(1, Cout).astype(jnp.float32)
    bias2 = bias.reshape(1, Cout).astype(jnp.float32)
    has_res = residual is not None

    args = [f.astype(jnp.bfloat16), w9, scale2, bias2]
    in_specs = [
        pl.BlockSpec((1, L, Cin), lambda b, j: (b, 0, 0)),
        pl.BlockSpec((9, Cin, tn), lambda b, j: (0, 0, j)),
        pl.BlockSpec((1, tn), lambda b, j: (0, j)),
        pl.BlockSpec((1, tn), lambda b, j: (0, j)),
    ]
    if has_res:
        args.append(residual.astype(jnp.bfloat16))
        in_specs.append(pl.BlockSpec((1, Mspan, tn), lambda b, j: (b, 0, j)))

    kernel = functools.partial(_conv3x3_kernel, Wp=Wp, W=W, Mspan=Mspan,
                               has_res=has_res)
    return pl.pallas_call(
        kernel,
        out_shape=jax.ShapeDtypeStruct((B, Mspan, Cout), jnp.bfloat16),
        grid=(B, Cout // tn),
        in_specs=in_specs,
        out_specs=pl.BlockSpec((1, Mspan, tn), lambda b, j: (b, 0, j)),
        scratch_shapes=[pltpu.VMEM((Mspan, tn), jnp.float32)],
        compiler_params=pltpu.CompilerParams(
            dimension_semantics=("parallel", "parallel"),
            vmem_limit_bytes=VMEM_LIMIT,
        ),
    )(*args)


def preprocess(x_nchw):
    """R3M/VisionEncoder RGB preprocessing (normalize_style='normal', high=255):
       x/255*2-1 then global standardize (x - mean)/std (unbiased), folded into
       a single lane-dense affine Pallas kernel; output is bf16 NHWC."""
    B, C, H, W = x_nchw.shape
    x = jnp.transpose(x_nchw, (0, 2, 3, 1)).astype(jnp.float32)  # NHWC
    a, c = 2.0 / 255.0, -1.0
    mean_y = a * jnp.mean(x) + c
    std_y = a * jnp.std(x, ddof=1)          # torch .std() is unbiased
    scale = a / std_y
    shift = (c - mean_y) / std_y
    sb = jnp.stack([scale, shift]).astype(jnp.float32)
    total = B * H * W * C
    lanes = 512 if total % 512 == 0 else (128 if total % 128 == 0 else total)
    flat = x.reshape(total // lanes, lanes)
    out = pl.pallas_call(
        _norm_kernel,
        out_shape=jax.ShapeDtypeStruct(flat.shape, jnp.bfloat16),
        in_specs=[
            pl.BlockSpec(memory_space=pltpu.MemorySpace.VMEM),
            pl.BlockSpec(memory_space=pltpu.MemorySpace.SMEM),
        ],
        out_specs=pl.BlockSpec(memory_space=pltpu.MemorySpace.VMEM),
    )(flat, sb)
    return out.reshape(B, H, W, C)


def im2col(x, kh, kw, stride, pad):
    """NHWC -> (B*Ho*Wo, kh*kw*C) patches (bf16). Only used for the 7x7/s2 stem
    conv and the three 3x3/s2 convs; stride-1 3x3 convs use conv3x3_fused."""
    B, H, W, C = x.shape
    xp = jnp.pad(x, ((0, 0), (pad, pad), (pad, pad), (0, 0)))
    Ho = (H + 2 * pad - kh) // stride + 1
    Wo = (W + 2 * pad - kw) // stride + 1
    cols = [xp[:, i:i + stride * Ho:stride, j:j + stride * Wo:stride, :]
            for i in range(kh) for j in range(kw)]
    patches = jnp.concatenate(cols, axis=-1)
    return patches.reshape(B * Ho * Wo, kh * kw * C), Ho, Wo


def maxpool3x3_s2(x):
    """3x3 / stride-2 / pad-1 max-pool.  Input is post-ReLU (>=0) so zero padding
    is equivalent to -inf padding; 4 phase views + one 9-way shifted-max kernel."""
    B, H, W, C = x.shape
    Ho, Wo = H // 2, W // 2
    xp = jnp.pad(x, ((0, 0), (1, 1), (1, 1), (0, 0)))
    ee = xp[:, 0::2, 0::2, :]
    eo = xp[:, 0::2, 1::2, :]
    oe = xp[:, 1::2, 0::2, :]
    oo = xp[:, 1::2, 1::2, :]
    Ph, Pw = ee.shape[1], ee.shape[2]
    spec = pl.BlockSpec((1, Ph, Pw, C), lambda b: (b, 0, 0, 0))
    return pl.pallas_call(
        _maxpool_kernel,
        out_shape=jax.ShapeDtypeStruct((B, Ho, Wo, C), x.dtype),
        grid=(B,),
        in_specs=[spec, spec, spec, spec],
        out_specs=pl.BlockSpec((1, Ho, Wo, C), lambda b: (b, 0, 0, 0)),
        compiler_params=pltpu.CompilerParams(dimension_semantics=("parallel",)),
    )(ee, eo, oe, oo)


def global_avgpool_flatjunk(g, H, W):
    kernel = functools.partial(_avgpool_kernel, inv_n=1.0 / float(H * W))
    B, _, C = g.shape
    return pl.pallas_call(
        kernel,
        out_shape=jax.ShapeDtypeStruct((B, C), jnp.float32),
        in_specs=[pl.BlockSpec(memory_space=pltpu.MemorySpace.VMEM)],
        out_specs=pl.BlockSpec(memory_space=pltpu.MemorySpace.VMEM),
    )(g)


# ---------------------------------------------------------------------------
# flat-junk layout helpers (plain-JAX, single-pass each)
# ---------------------------------------------------------------------------
def image_to_flatjunk(x):
    """(B,H,W,C) -> (B,(H-1)*(W+2)+W,C): rows separated by 2 zero junk columns."""
    B, H, W, C = x.shape
    Wp = W + 2
    Mspan = (H - 1) * Wp + W
    xw = jnp.pad(x, ((0, 0), (0, 0), (0, 2), (0, 0)))
    return xw.reshape(B, H * Wp, C)[:, :Mspan, :]


def flatjunk_to_image(g, H, W):
    B, Mspan, C = g.shape
    Wp = W + 2
    gp = jnp.pad(g, ((0, 0), (0, H * Wp - Mspan), (0, 0)))
    return gp.reshape(B, H, Wp, C)[:, :, :W, :]


def image_to_flatpad(x):
    """(B,H,W,C) -> (B,(H+2)*(W+2),C): fully zero-padded, flattened conv input."""
    B, H, W, C = x.shape
    xp = jnp.pad(x, ((0, 0), (1, 1), (1, 1), (0, 0)))
    return xp.reshape(B, (H + 2) * (W + 2), C)


def flatjunk_to_flatpad(g, H, W):
    """Add the boundary zeros: flat-junk -> flat padded conv input (one pad op)."""
    Wp = W + 2
    return jnp.pad(g, ((0, 0), (Wp + 1, W + 3), (0, 0)))


# ---------------------------------------------------------------------------
# Parameters (deterministic random init; matches module's random-init fallback)
# ---------------------------------------------------------------------------
def _kaiming(key, kh, kw, cin, cout):
    std = (2.0 / (kh * kw * cin)) ** 0.5
    return jax.random.normal(key, (kh, kw, cin, cout), jnp.float32) * std


def _bn_affine(c_real, c_pad):
    # eval-mode BN with default init (gamma=1, beta=0, rm=0, rv=1), folded;
    # padded channels get scale=bias=0 so they stay exactly zero.
    scale = jnp.full((c_real,), 1.0 / (1.0 + BN_EPS) ** 0.5, jnp.float32)
    bias = jnp.zeros((c_real,), jnp.float32)
    return (jnp.pad(scale, (0, c_pad - c_real)),
            jnp.pad(bias, (0, c_pad - c_real)))


def _pad_io(w, cin_pad, cout_pad):
    kh, kw, cin, cout = w.shape
    return jnp.pad(w, ((0, 0), (0, 0), (0, cin_pad - cin), (0, cout_pad - cout)))


def init_r3m_params(key, feature_dim=64):
    # TODO(synk): pretrained R3M weights (torch.hub download) are unavailable here.
    keys = iter(jax.random.split(key, 64))
    p = {"feature_dim": feature_dim}

    # stem conv (7x7/s2): K padded 147 -> 256, Cout padded 64 -> 128 (lane-dense)
    w = _kaiming(next(keys), 7, 7, 3, 64).reshape(49 * 3, 64)
    p["conv1_w"] = jnp.pad(w, ((0, 256 - 147), (0, 128 - 64))).astype(jnp.bfloat16)
    p["conv1_scale"], p["conv1_bias"] = _bn_affine(64, 128)

    layers = []
    in_real = 64
    for out_real, first_stride in zip([64, 128, 256, 512], [1, 2, 2, 2]):
        out_pad = max(out_real, 128)
        blocks = []
        for bi in range(2):
            s = first_stride if bi == 0 else 1
            cin_real = in_real
            cin_pad = max(cin_real, 128)
            blk = {}
            if s == 2:
                # conv1 (3x3/s2) uses the im2col + matmul path
                w1 = _pad_io(_kaiming(next(keys), 3, 3, cin_real, out_real),
                             cin_pad, out_pad)
                blk["w1"] = w1.reshape(9 * cin_pad, out_pad).astype(jnp.bfloat16)
                blk["s1"], blk["b1"] = _bn_affine(out_real, out_pad)
                dw = _pad_io(_kaiming(next(keys), 1, 1, cin_real, out_real),
                             cin_pad, out_pad)
                blk["down_w"] = dw.reshape(cin_pad, out_pad).astype(jnp.bfloat16)
                blk["down_s"], blk["down_b"] = _bn_affine(out_real, out_pad)
            else:
                # conv1 (3x3/s1) uses the fused no-im2col kernel
                w1 = _pad_io(_kaiming(next(keys), 3, 3, cin_real, out_real),
                             cin_pad, out_pad)
                blk["w1"] = w1.reshape(9, cin_pad, out_pad).astype(jnp.bfloat16)
                blk["s1"], blk["b1"] = _bn_affine(out_real, out_pad)
            w2 = _pad_io(_kaiming(next(keys), 3, 3, out_real, out_real),
                         out_pad, out_pad)
            blk["w2"] = w2.reshape(9, out_pad, out_pad).astype(jnp.bfloat16)
            blk["s2"], blk["b2"] = _bn_affine(out_real, out_pad)
            blocks.append(blk)
            in_real = out_real
        layers.append(blocks)
    p["layers"] = layers

    lim = 1.0 / (512 ** 0.5)
    pw = jax.random.uniform(next(keys), (512, feature_dim), jnp.float32, -lim, lim)
    pb = jax.random.uniform(next(keys), (feature_dim,), jnp.float32, -lim, lim)
    n_pad = ((feature_dim + 127) // 128) * 128
    p["proj_w"] = jnp.pad(pw, ((0, 0), (0, n_pad - feature_dim))).astype(jnp.bfloat16)
    p["proj_b"] = jnp.pad(pb, (0, n_pad - feature_dim))
    p["proj_scale"] = jnp.ones((n_pad,), jnp.float32)
    return p


# ---------------------------------------------------------------------------
# Forward pass (ResNet-18 backbone, fc=Identity, then Linear+ReLU projector)
# ---------------------------------------------------------------------------
def _identity_block(g, H, W, blk):
    f1 = flatjunk_to_flatpad(g, H, W)
    h1 = conv3x3_fused(f1, H, W, blk["w1"], blk["s1"], blk["b1"])
    f2 = flatjunk_to_flatpad(h1, H, W)
    # conv2 -> bn2 -> (+identity) -> relu fused in one kernel
    return conv3x3_fused(f2, H, W, blk["w2"], blk["s2"], blk["b2"], residual=g)


def _downsample_block(g, H, W, blk):
    B = g.shape[0]
    x_img = flatjunk_to_image(g, H, W)
    cin = x_img.shape[-1]
    cout = blk["w1"].shape[-1]
    # conv1: 3x3 / stride-2 via im2col + fused matmul
    patches, Ho, Wo = im2col(x_img, 3, 3, 2, 1)
    h1 = matmul_affine(patches, blk["w1"], blk["s1"], blk["b1"], relu=True)
    h1 = h1.reshape(B, Ho, Wo, cout)
    # downsample shortcut: 1x1 / stride-2
    xd = x_img[:, ::2, ::2, :].reshape(B * Ho * Wo, cin)
    sc = matmul_affine(xd, blk["down_w"], blk["down_s"], blk["down_b"], relu=False)
    sc = image_to_flatjunk(sc.reshape(B, Ho, Wo, cout))
    # conv2 -> bn2 -> (+shortcut) -> relu fused (no im2col)
    f2 = image_to_flatpad(h1)
    return conv3x3_fused(f2, Ho, Wo, blk["w2"], blk["s2"], blk["b2"], residual=sc)


def r3m_encoder_forward(x_nchw, params):
    B = x_nchw.shape[0]
    x = preprocess(x_nchw)                                           # (B,H,W,3) bf16
    # stem: conv1(7x7/s2) + bn1 + relu (K padded to 256, Cout padded to 128)
    patches, Ho, Wo = im2col(x, 7, 7, 2, 3)
    patches = jnp.pad(patches,
                      ((0, 0), (0, params["conv1_w"].shape[0] - patches.shape[1])))
    y = matmul_affine(patches, params["conv1_w"],
                      params["conv1_scale"], params["conv1_bias"], relu=True)
    x = y.reshape(B, Ho, Wo, params["conv1_w"].shape[1])
    x = maxpool3x3_s2(x)                                             # (B,H/4,W/4,128)
    H, W = x.shape[1], x.shape[2]
    g = image_to_flatjunk(x)                                         # flat-junk layout
    for blocks in params["layers"]:                                  # layer1..layer4
        for blk in blocks:
            if "down_w" in blk:
                g = _downsample_block(g, H, W, blk)
                H, W = H // 2, W // 2
            else:
                g = _identity_block(g, H, W, blk)
    feats = global_avgpool_flatjunk(g, H, W)                         # (B, 512) f32
    out = matmul_affine(feats, params["proj_w"], params["proj_scale"],
                        params["proj_b"], relu=True, out_dtype=jnp.float32)
    return out[:, :params["feature_dim"]]                            # (B, feature_dim)


if __name__ == "__main__":
    key = jax.random.PRNGKey(0)
    k_x, k_p = jax.random.split(key)
    # Input images in [0, 255], NCHW (B=2, C=3, H=W=64)
    x = jax.random.uniform(k_x, (2, 3, 64, 64), jnp.float32, 0.0, 255.0)
    params = init_r3m_params(k_p, feature_dim=64)
    out = jax.block_until_ready(r3m_encoder_forward(x, params))
    assert out.shape == (2, 64) and out.dtype == jnp.float32
    print("KERNEL_OK")
</pallas_src>

<mosaic_0001>
module attributes {stable_mosaic.version = 11 : i64} {
  func.func @_norm_kernel(%arg0: memref<48x512xf32, #tpu.memory_space<vmem>>, %arg1: memref<2xf32, #tpu.memory_space<smem>>, %arg2: memref<48x512xbf16, #tpu.memory_space<vmem>>) attributes {dimension_semantics = [], scalar_prefetch = 0 : i64, scratch_operands = 0 : i64, tpu.core_type = #tpu.core_type<tc>} {
    %c0 = arith.constant 0 : index
    %c0_0 = arith.constant 0 : index
    %0 = vector.load %arg0[%c0, %c0_0] : memref<48x512xf32, #tpu.memory_space<vmem>>, vector<48x512xf32>
    %c0_1 = arith.constant 0 : index
    %1 = memref.load %arg1[%c0_1] : memref<2xf32, #tpu.memory_space<smem>>
    %2 = vector.broadcast %1 : f32 to vector<48x512xf32>
    %3 = arith.mulf %0, %2 : vector<48x512xf32>
    %c1 = arith.constant 1 : index
    %4 = memref.load %arg1[%c1] : memref<2xf32, #tpu.memory_space<smem>>
    %5 = vector.broadcast %4 : f32 to vector<48x512xf32>
    %6 = arith.addf %3, %5 : vector<48x512xf32>
    %7 = arith.truncf %6 : vector<48x512xf32> to vector<48x512xbf16>
    %c0_2 = arith.constant 0 : index
    %c0_3 = arith.constant 0 : index
    %8 = vector.load %arg2[%c0_2, %c0_3] : memref<48x512xbf16, #tpu.memory_space<vmem>>, vector<48x512xbf16>
    tpu.vector_store %arg2[%c0_2, %c0_3], %7 {strides = array<i32>} : memref<48x512xbf16, #tpu.memory_space<vmem>>, vector<48x512xbf16>,
    return
  }
}

</mosaic_0001>

<bundles_post_ra>
// kernel: tpu_custom_call.1
= control target key start
LH: loop header
LB: loop body
LE: loop exit
PB: predicated region body
PF: predicated region fallthrough
CT: control target
= control target key end

     0   :  { %7 = vsyncpa [#allocation3], 0  ;;  %s412_s0 = inlined_call_operand.hbm [shape: f32[48,512], index: 0, kind: input, shape index: {}]   ;;  %s413_s1 = inlined_call_operand.vmem [shape: f32[2], index: 1, kind: input, shape index: {}]   ;;  %s414_s2 = inlined_call_operand.hbm [shape: bf16[48,512], index: 2, kind: output, shape index: {}]  }
   0x1   :  { %8 = vsyncpa [#allocation5], 0 }
   0x2   :  { %9 = vsyncpa [#allocation4], 0  ;;  %s311_s9 = smov [#allocation2]   ;;  %s28_s13 = sshll.u32 %s413_s1, 4  ;;  %s29_s13 = int_to_ptr.vmem [resolvable:$true] %s28_s13 }
   0x3   :  { %s15_s10 = sshll.u32 %s311_s9, 4  ;;  %s249_s16 = scalar_lea.hbm %s412_s0, 3072  ;;  %s16_s10 = int_to_ptr.vmem [resolvable:$true] %s15_s10 }
   0x4   :  { %p250_p0 = scmp.ne.s32.totalorder %s412_s0, %s249_s16  ;;  %p253_p1 = scmp.lt.u32.totalorder %s249_s16, %s412_s0 }
   0x6   :  { %p255_p2 = pnand %p253_p1, %p250_p0 }
   0x8   :  { %258 = shalt.err (!%p255_p2)
}
   0x9   :  { %s259_s21 = scalar_lea.vmem %s16_s10, 3072  ;;  %p264_p4 = scmp.lt.s32.totalorder %s16_s10, %s16_s10 }
   0xa   :  { %p260_p3 = scmp.ne.s32.totalorder %s16_s10, %s259_s21  ;;  %p265_p5 = scmp.lt.s32.totalorder %s259_s21, %s259_s21 }
   0xc   :  { %p266_p6 = por %p265_p5, %p264_p4 }
   0xe   :  { %p267_p7 = pnand %p266_p6, %p260_p3 }
  0x10   :  { %270 = shalt.err (!%p267_p7)
}
  0x11   :  { %s312_s1 = smov 512   ;;  %s313_s22 = smov 32  }
  0x12   :  { %21 = dma.hbm_to_vmem [thread:$0]  %s412_s0, 3072, %s16_s10, [#allocation3], %s312_s1, %s312_s1, %s313_s22  }
  0x13   :  { %s271_s25 = scalar_lea.vmem %s29_s13, 16  ;;  %p276_p9 = scmp.lt.s32.totalorder %s29_s13, %s29_s13 }
  0x14   :  { %p272_p8 = scmp.ne.s32.totalorder %s29_s13, %s271_s25  ;;  %p277_p10 = scmp.lt.s32.totalorder %s271_s25, %s271_s25 }
  0x16   :  { %p278_p11 = por %p277_p10, %p276_p9 }
  0x18   :  { %p279_p12 = pnand %p278_p11, %p272_p8 }
  0x1a   :  { %282 = shalt.err (!%p279_p12)
}
  0x1b   :  { %s314_s26 = smov [#allocation6]  }
  0x1c   :  { %31 = dma.vmem_to_smem %s29_s13, 16, %s314_s26, [#allocation5]  }
  0x1d   :  { %305 = dma.done.wait [#allocation3], 3072  }
  0x1e   :  { %306 = vsyncadd [#allocation3], 4294964224 }
  0x1f   :  { %307 = dma.done.wait [#allocation5], 16  }
  0x20   :  { %308 = vsyncadd [#allocation5], 4294967280 }
  0x21   :  { %38 = sfence }
  0x22   :  { %s63_s27 = sld [smem:[#allocation6]]  ;;  %s217_s28 = sld [smem:[#allocation6 + $0x1]]  ;;  %v39_v0 = vld [vmem:[#allocation2] sm:$0xff]  ;;  %v40_v1 = vld [vmem:[#allocation2 + $0x8] sm:$0xff]  ;;  %v41_v2 = vld [vmem:[#allocation2 + $0x10] sm:$0xff] }
  0x23   :  { %v42_v3 = vld [vmem:[#allocation2 + $0x18] sm:$0xff]  ;;  %v43_v4 = vld [vmem:[#allocation2 + $0x20] sm:$0xff]  ;;  %v44_v5 = vld [vmem:[#allocation2 + $0x28] sm:$0xff]  ;;  %s315_s0 = smov [#allocation7]  }
  0x24   :  { %v45_v6 = vld [vmem:[#allocation2 + $0x30] sm:$0xff]  ;;  %v46_v7 = vld [vmem:[#allocation2 + $0x38] sm:$0xff]  ;;  %v47_v18 = vld [vmem:[#allocation2 + $0x40] sm:$0xff]  ;;  %s204_s29 = sshll.u32 %s315_s0, 4  ;;  %s205_s29 = int_to_ptr.vmem [resolvable:$true] %s204_s29 }
  0x25   :  { %v48_v19 = vld [vmem:[#allocation2 + $0x48] sm:$0xff]  ;;  %v49_v24 = vld [vmem:[#allocation2 + $0x50] sm:$0xff]  ;;  %v50_v25 = vld [vmem:[#allocation2 + $0x58] sm:$0xff]  ;;  %s283_s30 = scalar_lea.vmem %s205_s29, 1536  ;;  %p288_p0 = scmp.lt.s32.totalorder %s205_s29, %s205_s29 }
  0x26   :  { %v51_v30 = vld [vmem:[#allocation2 + $0x60] sm:$0xff]  ;;  %v52_v31 = vld [vmem:[#allocation2 + $0x68] sm:$0xff]  ;;  %v53_v36 = vld [vmem:[#allocation2 + $0x70] sm:$0xff]  ;;  %p284_p13 = scmp.ne.s32.totalorder %s205_s29, %s283_s30  ;;  %p289_p1 = scmp.lt.s32.totalorder %s283_s30, %s283_s30 }
  0x27   :  { %v54_v37 = vld [vmem:[#allocation2 + $0x78] sm:$0xff]  ;;  %v55_v42 = vld [vmem:[#allocation2 + $0x80] sm:$0xff]  ;;  %v56_v47 = vld [vmem:[#allocation2 + $0x88] sm:$0xff] }
  0x28   :  { %v348_v8 = vstv %s63_s27  ;;  %v350_v9 = vstv %s217_s28  ;;  %v57_v52 = vld [vmem:[#allocation2 + $0x90] sm:$0xff]  ;;  %v58_v53 = vld [vmem:[#allocation2 + $0x98] sm:$0xff]  ;;  %v59_v58 = vld [vmem:[#allocation2 + $0xa0] sm:$0xff]  ;;  %p290_p2 = por %p289_p1, %p288_p0 }
  0x29   :  { %v65_v10 = vmul.f32 %v348_v8, %v39_v0  ;;  %v66_v11 = vmul.f32 %v348_v8, %v40_v1  ;;  %v67_v12 = vmul.f32 %v348_v8, %v41_v2  ;;  %v68_v13 = vmul.f32 %v348_v8, %v42_v3  ;;  %v60_v59 = vld [vmem:[#allocation2 + $0xa8] sm:$0xff]  ;;  %v61_v0 = vld [vmem:[#allocation2 + $0xb0] sm:$0xff]  ;;  %v62_v1 = vld [vmem:[#allocation2 + $0xb8] sm:$0xff] }
  0x2a   :  { %v69_v14 = vmul.f32 %v348_v8, %v43_v4  ;;  %v70_v15 = vmul.f32 %v348_v8, %v44_v5  ;;  %v71_v16 = vmul.f32 %v348_v8, %v45_v6  ;;  %v72_v17 = vmul.f32 %v348_v8, %v46_v7  ;;  %p291_p3 = pnand %p290_p2, %p284_p13 }
  0x2b   :  { %v91_v20 = vadd.f32 %v350_v9, %v65_v10  ;;  %v92_v21 = vadd.f32 %v350_v9, %v66_v11  ;;  %v93_v22 = vadd.f32 %v350_v9, %v67_v12  ;;  %v94_v23 = vadd.f32 %v350_v9, %v68_v13 }
  0x2c   :  { %v95_v26 = vadd.f32 %v350_v9, %v69_v14  ;;  %v96_v27 = vadd.f32 %v350_v9, %v70_v15  ;;  %v97_v28 = vadd.f32 %v350_v9, %v71_v16  ;;  %v98_v29 = vadd.f32 %v350_v9, %v72_v17 }
  0x2d   :  { %v230_v32 = vpack.c.bf16 %v92_v21, %v91_v20  ;;  %v231_v33 = vpack.c.bf16 %v94_v23, %v93_v22  ;;  %v73_v34 = vmul.f32 %v348_v8, %v47_v18  ;;  %v74_v35 = vmul.f32 %v348_v8, %v48_v19 }
  0x2e   :  { %v232_v38 = vpack.c.bf16 %v96_v27, %v95_v26  ;;  %v233_v39 = vpack.c.bf16 %v98_v29, %v97_v28  ;;  %v75_v40 = vmul.f32 %v348_v8, %v49_v24  ;;  %v76_v41 = vmul.f32 %v348_v8, %v50_v25 }
  0x2f   :  { %187 = vst [vmem:[#allocation7] sm:$0xff] %v230_v32  ;;  %188 = vst [vmem:[#allocation7 + $0x8] sm:$0xff] %v231_v33  ;;  %v99_v43 = vadd.f32 %v350_v9, %v73_v34  ;;  %v100_v44 = vadd.f32 %v350_v9, %v74_v35  ;;  %v77_v45 = vmul.f32 %v348_v8, %v51_v30 }
  0x30   :  { %v78_v46 = vmul.f32 %v348_v8, %v52_v31  ;;  %189 = vst [vmem:[#allocation7 + $0x10] sm:$0xff] %v232_v38  ;;  %190 = vst [vmem:[#allocation7 + $0x18] sm:$0xff] %v233_v39  ;;  %v101_v48 = vadd.f32 %v350_v9, %v75_v40  ;;  %v102_v49 = vadd.f32 %v350_v9, %v76_v41 }
  0x31   :  { %v79_v50 = vmul.f32 %v348_v8, %v53_v36  ;;  %v80_v51 = vmul.f32 %v348_v8, %v54_v37  ;;  %v234_v54 = vpack.c.bf16 %v100_v44, %v99_v43  ;;  %v103_v55 = vadd.f32 %v350_v9, %v77_v45 }
  0x32   :  { %v104_v56 = vadd.f32 %v350_v9, %v78_v46  ;;  %v81_v57 = vmul.f32 %v348_v8, %v55_v42  ;;  %v235_v60 = vpack.c.bf16 %v102_v49, %v101_v48  ;;  %v82_v63 = vmul.f32 %v348_v8, %v56_v47 }
  0x33   :  { %v105_v61 = vadd.f32 %v350_v9, %v79_v50  ;;  %v106_v62 = vadd.f32 %v350_v9, %v80_v51  ;;  %191 = vst [vmem:[#allocation7 + $0x20] sm:$0xff] %v234_v54  ;;  %v83_v4 = vmul.f32 %v348_v8, %v57_v52  ;;  %v84_v5 = vmul.f32 %v348_v8, %v58_v53 }
  0x34   :  { %v236_v2 = vpack.c.bf16 %v104_v56, %v103_v55  ;;  %v107_v3 = vadd.f32 %v350_v9, %v81_v57  ;;  %192 = vst [vmem:[#allocation7 + $0x28] sm:$0xff] %v235_v60  ;;  %v108_v7 = vadd.f32 %v350_v9, %v82_v63  ;;  %v85_v10 = vmul.f32 %v348_v8, %v59_v58 }
  0x35   :  { %v237_v6 = vpack.c.bf16 %v106_v62, %v105_v61  ;;  %v86_v11 = vmul.f32 %v348_v8, %v60_v59  ;;  %v109_v12 = vadd.f32 %v350_v9, %v83_v4  ;;  %v110_v13 = vadd.f32 %v350_v9, %v84_v5 }
  0x36   :  { %193 = vst [vmem:[#allocation7 + $0x30] sm:$0xff] %v236_v2  ;;  %v87_v14 = vmul.f32 %v348_v8, %v61_v0  ;;  %v88_v15 = vmul.f32 %v348_v8, %v62_v1  ;;  %v238_v16 = vpack.c.bf16 %v108_v7, %v107_v3  ;;  %v111_v17 = vadd.f32 %v350_v9, %v85_v10 }
  0x37   :  { %194 = vst [vmem:[#allocation7 + $0x38] sm:$0xff] %v237_v6  ;;  %v112_v18 = vadd.f32 %v350_v9, %v86_v11  ;;  %v239_v19 = vpack.c.bf16 %v110_v13, %v109_v12 }
  0x38   :  { %v113_v20 = vadd.f32 %v350_v9, %v87_v14  ;;  %v114_v21 = vadd.f32 %v350_v9, %v88_v15  ;;  %195 = vst [vmem:[#allocation7 + $0x40] sm:$0xff] %v238_v16 }
  0x39   :  { %v240_v22 = vpack.c.bf16 %v112_v18, %v111_v17  ;;  %196 = vst [vmem:[#allocation7 + $0x48] sm:$0xff] %v239_v19 }
  0x3a   :  { %v241_v23 = vpack.c.bf16 %v114_v21, %v113_v20 }
  0x3b   :  { %197 = vst [vmem:[#allocation7 + $0x50] sm:$0xff] %v240_v22 }
  0x3c   :  { %198 = vst [vmem:[#allocation7 + $0x58] sm:$0xff] %v241_v23 }
  0x3d   :  { %294 = shalt.err (!%p291_p3)
}
  0x3e   :  { %s295_s5 = scalar_lea.hbm %s414_s2, 1536 }
  0x3f   :  { %p296_p4 = scmp.ne.s32.totalorder %s414_s2, %s295_s5  ;;  %p299_p5 = scmp.lt.u32.totalorder %s295_s5, %s414_s2 }
  0x41   :  { %p301_p6 = pnand %p299_p5, %p296_p4 }
  0x43   :  { %304 = shalt.err (!%p301_p6)
}
  0x44   :  { %s316_s10 = smov 256   ;;  %s317_s11 = smov 16  }
  0x45   :  { %210 = dma.vmem_to_hbm [thread:$0]  %s205_s29, 1536, %s414_s2, [#allocation4], %s316_s10, %s316_s10, %s317_s11  }
  0x46   :  { %309 = dma.done.wait [#allocation4], 1536  }
  0x47   :  { %310 = vsyncadd [#allocation4], 4294965760 }
  0x48   :  { %214 = vsyncpa [#allocation3], 1 }
  0x49   :  { %215 = vsyncpa [#allocation4], 1 }
  0x4a   :  { %216 = vsyncpa [#allocation5], 1 }

</bundles_post_ra>
